<compile_context>
chip_gen: v7x
topology: tpu7x:2x2x1
jax: 0.10.0
libtpu: 0.0.40
codegen_flags: <defaults>
</compile_context>

<pallas_src>
import math

import jax
import jax.numpy as jnp
from jax.experimental import pallas as pl
from jax.experimental.pallas import tpu as pltpu

LEAKY_SLOPE = 0.01                      # torch.nn.LeakyReLU default
LOG_SQRT_2PI = 0.5 * math.log(2.0 * math.pi)
LANE = 128                              # vreg lane width / packing stride


def _round_up(n, m):
    return ((n + m - 1) // m) * m


def policy_kernel(x_ref, w0_ref, w1_ref, w2_ref, w3_ref, whead_ref,
                  bias_ref, eps_ref, act_ref, lp_ref):
    """One batch tile: hidden MLP + fused lane-padded mu/std head + sample."""

    def leaky(v):
        return jnp.where(v >= 0.0, v, LEAKY_SLOPE * v)

    def matmul(a, w_ref):
        # bf16 MXU inputs, f32 accumulation.
        return jnp.dot(a.astype(jnp.bfloat16), w_ref[...],
                       preferred_element_type=jnp.float32)

    def bias_slot(k, width):
        # Packed biases: slot k starts at lane k * LANE (static slices).
        return bias_ref[:, k * LANE:k * LANE + width]

    # Hidden MLP: Linear -> (LeakyReLU -> Linear) * 3.
    # (final_activation is None in the reference module.)
    h = matmul(x_ref[...], w0_ref) + bias_slot(0, w0_ref.shape[1])
    h = matmul(leaky(h), w1_ref) + bias_slot(1, w1_ref.shape[1])
    h = matmul(leaky(h), w2_ref) + bias_slot(2, w2_ref.shape[1])
    h = matmul(leaky(h), w3_ref) + bias_slot(3, w3_ref.shape[1])

    # Fused head, each half padded to a full 128-lane slot:
    #   lanes [0, 128)   = mu   (action_dim real lanes, rest zero-padded)
    #   lanes [128, 256) = std logits
    head = matmul(h, whead_ref) + bias_ref[:, 4 * LANE:6 * LANE]
    mu = head[:, :LANE]
    z_std = head[:, LANE:]

    # Numerically stable softplus; element-wise math stays in float32.
    std = jnp.maximum(z_std, 0.0) + jnp.log1p(jnp.exp(-jnp.abs(z_std)))

    eps = eps_ref[...]
    action = mu + std * eps                          # rsample
    t = jnp.tanh(action)

    # Normal(mu, std).log_prob(action); note (action - mu) / std == eps.
    log_prob = -0.5 * eps * eps - jnp.log(std) - LOG_SQRT_2PI
    real_log_prob = log_prob - jnp.log(1.0 - t * t + 1e-7)

    # Full-width (128-lane) unmasked stores; wrapper slices to action_dim.
    act_ref[...] = t
    lp_ref[...] = real_log_prob


def pack_params(params):
    """Pack torch-layout-equivalent f32 params into kernel-ready buffers."""
    action_dim = params["wmu"].shape[1]
    assert action_dim <= LANE, "action_dim must fit in one lane slot"

    # Head weights: mu padded into lanes [0,128), std into [128,256).
    wmu = jnp.pad(params["wmu"], ((0, 0), (0, LANE - action_dim)))
    wstd = jnp.pad(params["wstd"], ((0, 0), (0, LANE - action_dim)))
    whead = jnp.concatenate([wmu, wstd], axis=1)

    bmu = jnp.pad(params["bmu"], ((0, 0), (0, LANE - action_dim)))
    bstd = jnp.pad(params["bstd"], ((0, 0), (0, LANE - action_dim)))
    biases = [params["b0"], params["b1"], params["b2"], params["b3"],
              bmu, bstd]
    assert all(b.shape[1] <= LANE for b in biases)
    bias_pack = jnp.concatenate(
        [jnp.pad(b, ((0, 0), (0, LANE - b.shape[1]))) for b in biases],
        axis=1).astype(jnp.float32)                   # (1, 6 * 128)

    return {
        "w0": params["w0"].astype(jnp.bfloat16),
        "w1": params["w1"].astype(jnp.bfloat16),
        "w2": params["w2"].astype(jnp.bfloat16),
        "w3": params["w3"].astype(jnp.bfloat16),
        "whead": whead.astype(jnp.bfloat16),          # (h_last, 256)
        "bias": bias_pack,
    }


def policy_net_forward(x, packed, eps, *, block_batch=512):
    batch, in_size = x.shape
    action_dim = eps.shape[1]
    assert action_dim <= LANE

    tb = min(block_batch, _round_up(batch, 8))        # batch tile (sublane mult.)
    pb = _round_up(batch, tb)                         # padded batch
    grid = (pb // tb,)

    x_p = jnp.pad(x.astype(jnp.float32), ((0, pb - batch), (0, 0)))
    eps_p = jnp.pad(eps.astype(jnp.float32),
                    ((0, pb - batch), (0, LANE - action_dim)))

    def tile_spec(width):
        return pl.BlockSpec((tb, width), lambda i: (i, 0))

    def resident_spec(arr):                           # same block every step
        return pl.BlockSpec(arr.shape, lambda i: (0, 0))

    act_p, lp_p = pl.pallas_call(
        policy_kernel,
        grid=grid,
        in_specs=[
            tile_spec(in_size),                       # x   (pipelined per tile)
            resident_spec(packed["w0"]),
            resident_spec(packed["w1"]),
            resident_spec(packed["w2"]),
            resident_spec(packed["w3"]),
            resident_spec(packed["whead"]),
            resident_spec(packed["bias"]),
            tile_spec(LANE),                          # eps (pipelined per tile)
        ],
        out_specs=(tile_spec(LANE), tile_spec(LANE)),
        out_shape=(
            jax.ShapeDtypeStruct((pb, LANE), jnp.float32),
            jax.ShapeDtypeStruct((pb, LANE), jnp.float32),
        ),
        compiler_params=pltpu.CompilerParams(
            dimension_semantics=("parallel",)),
    )(x_p, packed["w0"], packed["w1"], packed["w2"], packed["w3"],
      packed["whead"], packed["bias"], eps_p)

    real_action = act_p[:batch, :action_dim]
    real_log_prob_sum = jnp.sum(lp_p[:batch, :action_dim])
    return real_action, real_log_prob_sum


def init_params(key, in_size, action_dim, layers=(64, 64, 32, 32)):
    """Deterministic synthetic parameter init (weights stored as (in, out))."""
    params = {}
    sizes = [in_size] + list(layers)
    keys = jax.random.split(key, len(layers) + 2)
    for i in range(len(layers)):
        fan_in, fan_out = sizes[i], sizes[i + 1]
        params[f"w{i}"] = (0.1 * jax.random.normal(
            keys[i], (fan_in, fan_out))).astype(jnp.float32)
        params[f"b{i}"] = jnp.full((1, fan_out), 0.01, dtype=jnp.float32)
    h_last = layers[-1]
    params["wmu"] = (0.1 * jax.random.normal(
        keys[-2], (h_last, action_dim))).astype(jnp.float32)
    params["bmu"] = jnp.zeros((1, action_dim), dtype=jnp.float32)
    params["wstd"] = (0.1 * jax.random.normal(
        keys[-1], (h_last, action_dim))).astype(jnp.float32)
    params["bstd"] = jnp.zeros((1, action_dim), dtype=jnp.float32)
    return params


def policy_net_reference(x, params, eps):
    """Pure-JAX float32 reference mirroring the PyTorch forward."""
    h = x @ params["w0"] + params["b0"]
    for i in (1, 2, 3):
        h = jnp.where(h >= 0.0, h, LEAKY_SLOPE * h)
        h = h @ params[f"w{i}"] + params[f"b{i}"]
    mu = h @ params["wmu"] + params["bmu"]
    std = jax.nn.softplus(h @ params["wstd"] + params["bstd"])
    action = mu + std * eps
    log_prob = -0.5 * ((action - mu) / std) ** 2 - jnp.log(std) - LOG_SQRT_2PI
    t = jnp.tanh(action)
    real_log_prob = log_prob - jnp.log(1.0 - t * t + 1e-7)
    return t, jnp.sum(real_log_prob)


if __name__ == "__main__":
    batch = 2
    in_size = 8          # state dimension
    action_dim = 4       # action_space_size

    root = jax.random.PRNGKey(0)
    k_param, k_x, k_eps = jax.random.split(root, 3)

    params = init_params(k_param, in_size, action_dim)
    packed = pack_params(params)
    x = jax.random.normal(k_x, (batch, in_size), dtype=jnp.float32)
    eps = jax.random.normal(k_eps, (batch, action_dim), dtype=jnp.float32)

    fwd = jax.jit(policy_net_forward)
    real_action, real_log_prob_sum = fwd(x, packed, eps)
    jax.block_until_ready((real_action, real_log_prob_sum))

    ref_action, ref_lp_sum = policy_net_reference(x, params, eps)

    assert real_action.shape == (batch, action_dim)
    assert real_log_prob_sum.shape == ()
    assert bool(jnp.all(jnp.abs(real_action) <= 1.0))
    assert bool(jnp.isfinite(real_log_prob_sum))
    # bf16 MXU inputs -> loose tolerance against the f32 reference.
    assert bool(jnp.allclose(real_action, ref_action, atol=5e-2, rtol=5e-2))
    assert bool(jnp.abs(real_log_prob_sum - ref_lp_sum)
                <= 0.05 * batch * action_dim + 0.05)

    print("KERNEL_OK")
</pallas_src>

<mosaic_0001>
module attributes {stable_mosaic.version = 11 : i64} {
  func.func @policy_kernel(%arg0: i32, %arg1: memref<8x8xf32, #tpu.memory_space<vmem>>, %arg2: memref<8x64xbf16, #tpu.memory_space<vmem>>, %arg3: memref<64x64xbf16, #tpu.memory_space<vmem>>, %arg4: memref<64x32xbf16, #tpu.memory_space<vmem>>, %arg5: memref<32x32xbf16, #tpu.memory_space<vmem>>, %arg6: memref<32x256xbf16, #tpu.memory_space<vmem>>, %arg7: memref<1x768xf32, #tpu.memory_space<vmem>>, %arg8: memref<8x128xf32, #tpu.memory_space<vmem>>, %arg9: memref<8x128xf32, #tpu.memory_space<vmem>>, %arg10: memref<8x128xf32, #tpu.memory_space<vmem>>) attributes {dimension_semantics = [#tpu.dimension_semantics<parallel>], iteration_bounds = array<i64: 1>, scalar_prefetch = 0 : i64, scratch_operands = 0 : i64, tpu.core_type = #tpu.core_type<tc>, window_params = [{transform_indices = @transform_0, window_bounds = array<i64: 8, 8>}, {pipeline_mode = #tpu.pipeline_mode<synchronous>, transform_indices = @transform_1, window_bounds = array<i64: 8, 64>}, {pipeline_mode = #tpu.pipeline_mode<synchronous>, transform_indices = @transform_2, window_bounds = array<i64: 64, 64>}, {pipeline_mode = #tpu.pipeline_mode<synchronous>, transform_indices = @transform_3, window_bounds = array<i64: 64, 32>}, {pipeline_mode = #tpu.pipeline_mode<synchronous>, transform_indices = @transform_4, window_bounds = array<i64: 32, 32>}, {pipeline_mode = #tpu.pipeline_mode<synchronous>, transform_indices = @transform_5, window_bounds = array<i64: 32, 256>}, {pipeline_mode = #tpu.pipeline_mode<synchronous>, transform_indices = @transform_6, window_bounds = array<i64: 1, 768>}, {transform_indices = @transform_7, window_bounds = array<i64: 8, 128>}, {transform_indices = @transform_8, window_bounds = array<i64: 8, 128>}, {transform_indices = @transform_9, window_bounds = array<i64: 8, 128>}]} {
    %c0 = arith.constant 0 : index
    %c0_0 = arith.constant 0 : index
    %0 = vector.load %arg1[%c0, %c0_0] : memref<8x8xf32, #tpu.memory_space<vmem>>, vector<8x8xf32>
    %1 = arith.truncf %0 : vector<8x8xf32> to vector<8x8xbf16>
    %c0_1 = arith.constant 0 : index
    %c0_2 = arith.constant 0 : index
    %2 = vector.load %arg2[%c0_1, %c0_2] : memref<8x64xbf16, #tpu.memory_space<vmem>>, vector<8x64xbf16>
    %cst = arith.constant dense<0.000000e+00> : vector<8x64xf32>
    %3 = tpu.matmul %1, %2, %cst {dimension_numbers = #tpu.dot_dimension_numbers<[1], [0], [0], [1], [0, 0, 1, 1], [], []>} : vector<8x8xbf16>, vector<8x64xbf16>, vector<8x64xf32> -> vector<8x64xf32>
    %c0_3 = arith.constant 0 : index
    %c0_4 = arith.constant 0 : index
    %4 = vector.load %arg7[%c0_3, %c0_4] : memref<1x768xf32, #tpu.memory_space<vmem>>, vector<1x64xf32>
    %5 = vector.broadcast %4 : vector<1x64xf32> to vector<8x64xf32>
    %6 = arith.addf %3, %5 : vector<8x64xf32>
    %cst_5 = arith.constant 0.000000e+00 : f32
    %7 = vector.broadcast %cst_5 : f32 to vector<8x64xf32>
    %8 = arith.cmpf oge, %6, %7 : vector<8x64xf32>
    %cst_6 = arith.constant 0.00999999977 : f32
    %9 = vector.broadcast %cst_6 : f32 to vector<8x64xf32>
    %10 = arith.mulf %9, %6 : vector<8x64xf32>
    %11 = arith.select %8, %6, %10 : vector<8x64xi1>, vector<8x64xf32>
    %12 = arith.truncf %11 : vector<8x64xf32> to vector<8x64xbf16>
    %c0_7 = arith.constant 0 : index
    %c0_8 = arith.constant 0 : index
    %13 = vector.load %arg3[%c0_7, %c0_8] : memref<64x64xbf16, #tpu.memory_space<vmem>>, vector<64x64xbf16>
    %cst_9 = arith.constant dense<0.000000e+00> : vector<8x64xf32>
    %14 = tpu.matmul %12, %13, %cst_9 {dimension_numbers = #tpu.dot_dimension_numbers<[1], [0], [0], [1], [0, 0, 1, 1], [], []>} : vector<8x64xbf16>, vector<64x64xbf16>, vector<8x64xf32> -> vector<8x64xf32>
    %c0_10 = arith.constant 0 : index
    %c128 = arith.constant 128 : index
    %15 = vector.load %arg7[%c0_10, %c128] : memref<1x768xf32, #tpu.memory_space<vmem>>, vector<1x64xf32>
    %16 = vector.broadcast %15 : vector<1x64xf32> to vector<8x64xf32>
    %17 = arith.addf %14, %16 : vector<8x64xf32>
    %cst_11 = arith.constant 0.000000e+00 : f32
    %18 = vector.broadcast %cst_11 : f32 to vector<8x64xf32>
    %19 = arith.cmpf oge, %17, %18 : vector<8x64xf32>
    %cst_12 = arith.constant 0.00999999977 : f32
    %20 = vector.broadcast %cst_12 : f32 to vector<8x64xf32>
    %21 = arith.mulf %20, %17 : vector<8x64xf32>
    %22 = arith.select %19, %17, %21 : vector<8x64xi1>, vector<8x64xf32>
    %23 = arith.truncf %22 : vector<8x64xf32> to vector<8x64xbf16>
    %c0_13 = arith.constant 0 : index
    %c0_14 = arith.constant 0 : index
    %24 = vector.load %arg4[%c0_13, %c0_14] : memref<64x32xbf16, #tpu.memory_space<vmem>>, vector<64x32xbf16>
    %cst_15 = arith.constant dense<0.000000e+00> : vector<8x32xf32>
    %25 = tpu.matmul %23, %24, %cst_15 {dimension_numbers = #tpu.dot_dimension_numbers<[1], [0], [0], [1], [0, 0, 1, 1], [], []>} : vector<8x64xbf16>, vector<64x32xbf16>, vector<8x32xf32> -> vector<8x32xf32>
    %c0_16 = arith.constant 0 : index
    %c256 = arith.constant 256 : index
    %26 = vector.load %arg7[%c0_16, %c256] : memref<1x768xf32, #tpu.memory_space<vmem>>, vector<1x32xf32>
    %27 = vector.broadcast %26 : vector<1x32xf32> to vector<8x32xf32>
    %28 = arith.addf %25, %27 : vector<8x32xf32>
    %cst_17 = arith.constant 0.000000e+00 : f32
    %29 = vector.broadcast %cst_17 : f32 to vector<8x32xf32>
    %30 = arith.cmpf oge, %28, %29 : vector<8x32xf32>
    %cst_18 = arith.constant 0.00999999977 : f32
    %31 = vector.broadcast %cst_18 : f32 to vector<8x32xf32>
    %32 = arith.mulf %31, %28 : vector<8x32xf32>
    %33 = arith.select %30, %28, %32 : vector<8x32xi1>, vector<8x32xf32>
    %34 = arith.truncf %33 : vector<8x32xf32> to vector<8x32xbf16>
    %c0_19 = arith.constant 0 : index
    %c0_20 = arith.constant 0 : index
    %35 = vector.load %arg5[%c0_19, %c0_20] : memref<32x32xbf16, #tpu.memory_space<vmem>>, vector<32x32xbf16>
    %cst_21 = arith.constant dense<0.000000e+00> : vector<8x32xf32>
    %36 = tpu.matmul %34, %35, %cst_21 {dimension_numbers = #tpu.dot_dimension_numbers<[1], [0], [0], [1], [0, 0, 1, 1], [], []>} : vector<8x32xbf16>, vector<32x32xbf16>, vector<8x32xf32> -> vector<8x32xf32>
    %c0_22 = arith.constant 0 : index
    %c384 = arith.constant 384 : index
    %37 = vector.load %arg7[%c0_22, %c384] : memref<1x768xf32, #tpu.memory_space<vmem>>, vector<1x32xf32>
    %38 = vector.broadcast %37 : vector<1x32xf32> to vector<8x32xf32>
    %39 = arith.addf %36, %38 : vector<8x32xf32>
    %40 = arith.truncf %39 : vector<8x32xf32> to vector<8x32xbf16>
    %c0_23 = arith.constant 0 : index
    %c0_24 = arith.constant 0 : index
    %41 = vector.load %arg6[%c0_23, %c0_24] : memref<32x256xbf16, #tpu.memory_space<vmem>>, vector<32x256xbf16>
    %cst_25 = arith.constant dense<0.000000e+00> : vector<8x256xf32>
    %42 = tpu.matmul %40, %41, %cst_25 {dimension_numbers = #tpu.dot_dimension_numbers<[1], [0], [0], [1], [0, 0, 1, 1], [], []>} : vector<8x32xbf16>, vector<32x256xbf16>, vector<8x256xf32> -> vector<8x256xf32>
    %c0_26 = arith.constant 0 : index
    %c512 = arith.constant 512 : index
    %43 = vector.load %arg7[%c0_26, %c512] : memref<1x768xf32, #tpu.memory_space<vmem>>, vector<1x256xf32>
    %44 = vector.broadcast %43 : vector<1x256xf32> to vector<8x256xf32>
    %45 = arith.addf %42, %44 : vector<8x256xf32>
    %46 = vector.extract_strided_slice %45 {offsets = [0, 0], sizes = [8, 128], strides = [1, 1]} : vector<8x256xf32> to vector<8x128xf32>
    %47 = vector.extract_strided_slice %45 {offsets = [0, 128], sizes = [8, 128], strides = [1, 1]} : vector<8x256xf32> to vector<8x128xf32>
    %cst_27 = arith.constant 0.000000e+00 : f32
    %48 = vector.broadcast %cst_27 : f32 to vector<8x128xf32>
    %49 = arith.maximumf %47, %48 : vector<8x128xf32>
    %50 = math.absf %47 : vector<8x128xf32>
    %cst_28 = arith.constant 0.000000e+00 : f32
    %51 = vector.broadcast %cst_28 : f32 to vector<8x128xf32>
    %52 = arith.subf %51, %50 : vector<8x128xf32>
    %53 = math.exp %52 : vector<8x128xf32>
    %54 = math.log1p %53 : vector<8x128xf32>
    %55 = arith.addf %49, %54 : vector<8x128xf32>
    %c0_29 = arith.constant 0 : index
    %c0_30 = arith.constant 0 : index
    %56 = vector.load %arg8[%c0_29, %c0_30] : memref<8x128xf32, #tpu.memory_space<vmem>>, vector<8x128xf32>
    %57 = arith.mulf %55, %56 : vector<8x128xf32>
    %58 = arith.addf %46, %57 : vector<8x128xf32>
    %59 = math.tanh %58 : vector<8x128xf32>
    %cst_31 = arith.constant -5.000000e-01 : f32
    %60 = vector.broadcast %cst_31 : f32 to vector<8x128xf32>
    %61 = arith.mulf %60, %56 : vector<8x128xf32>
    %62 = arith.mulf %61, %56 : vector<8x128xf32>
    %63 = math.log %55 : vector<8x128xf32>
    %64 = arith.subf %62, %63 : vector<8x128xf32>
    %cst_32 = arith.constant 0.918938517 : f32
    %65 = vector.broadcast %cst_32 : f32 to vector<8x128xf32>
    %66 = arith.subf %64, %65 : vector<8x128xf32>
    %67 = arith.mulf %59, %59 : vector<8x128xf32>
    %cst_33 = arith.constant 1.000000e+00 : f32
    %68 = vector.broadcast %cst_33 : f32 to vector<8x128xf32>
    %69 = arith.subf %68, %67 : vector<8x128xf32>
    %cst_34 = arith.constant 1.000000e-07 : f32
    %70 = vector.broadcast %cst_34 : f32 to vector<8x128xf32>
    %71 = arith.addf %69, %70 : vector<8x128xf32>
    %72 = math.log %71 : vector<8x128xf32>
    %73 = arith.subf %66, %72 : vector<8x128xf32>
    %c0_35 = arith.constant 0 : index
    %c0_36 = arith.constant 0 : index
    %74 = vector.load %arg9[%c0_35, %c0_36] : memref<8x128xf32, #tpu.memory_space<vmem>>, vector<8x128xf32>
    tpu.vector_store %arg9[%c0_35, %c0_36], %59 {strides = array<i32>} : memref<8x128xf32, #tpu.memory_space<vmem>>, vector<8x128xf32>,
    %c0_37 = arith.constant 0 : index
    %c0_38 = arith.constant 0 : index
    %75 = vector.load %arg10[%c0_37, %c0_38] : memref<8x128xf32, #tpu.memory_space<vmem>>, vector<8x128xf32>
    tpu.vector_store %arg10[%c0_37, %c0_38], %73 {strides = array<i32>} : memref<8x128xf32, #tpu.memory_space<vmem>>, vector<8x128xf32>,
    return
  }
  func.func @transform_0(%arg0: i32) -> (i32, i32) {
    %c0_i32 = arith.constant 0 : i32
    %c0_i32_0 = arith.constant 0 : i32
    return %arg0, %c0_i32 : i32, i32
  }
  func.func @transform_1(%arg0: i32) -> (i32, i32) {
    %c0_i32 = arith.constant 0 : i32
    %c0_i32_0 = arith.constant 0 : i32
    %c0_i32_1 = arith.constant 0 : i32
    return %c0_i32, %c0_i32_0 : i32, i32
  }
  func.func @transform_2(%arg0: i32) -> (i32, i32) {
    %c0_i32 = arith.constant 0 : i32
    %c0_i32_0 = arith.constant 0 : i32
    %c0_i32_1 = arith.constant 0 : i32
    return %c0_i32, %c0_i32_0 : i32, i32
  }
  func.func @transform_3(%arg0: i32) -> (i32, i32) {
    %c0_i32 = arith.constant 0 : i32
    %c0_i32_0 = arith.constant 0 : i32
    %c0_i32_1 = arith.constant 0 : i32
    return %c0_i32, %c0_i32_0 : i32, i32
  }
  func.func @transform_4(%arg0: i32) -> (i32, i32) {
    %c0_i32 = arith.constant 0 : i32
    %c0_i32_0 = arith.constant 0 : i32
    %c0_i32_1 = arith.constant 0 : i32
    return %c0_i32, %c0_i32_0 : i32, i32
  }
  func.func @transform_5(%arg0: i32) -> (i32, i32) {
    %c0_i32 = arith.constant 0 : i32
    %c0_i32_0 = arith.constant 0 : i32
    %c0_i32_1 = arith.constant 0 : i32
    return %c0_i32, %c0_i32_0 : i32, i32
  }
  func.func @transform_6(%arg0: i32) -> (i32, i32) {
    %c0_i32 = arith.constant 0 : i32
    %c0_i32_0 = arith.constant 0 : i32
    %c0_i32_1 = arith.constant 0 : i32
    return %c0_i32, %c0_i32_0 : i32, i32
  }
  func.func @transform_7(%arg0: i32) -> (i32, i32) {
    %c0_i32 = arith.constant 0 : i32
    %c0_i32_0 = arith.constant 0 : i32
    return %arg0, %c0_i32 : i32, i32
  }
  func.func @transform_8(%arg0: i32) -> (i32, i32) {
    %c0_i32 = arith.constant 0 : i32
    %c0_i32_0 = arith.constant 0 : i32
    return %arg0, %c0_i32 : i32, i32
  }
  func.func @transform_9(%arg0: i32) -> (i32, i32) {
    %c0_i32 = arith.constant 0 : i32
    %c0_i32_0 = arith.constant 0 : i32
    return %arg0, %c0_i32 : i32, i32
  }
}

</mosaic_0001>

<bundles_post_ra>
// kernel: policy_net_forward.1
= control target key start
LH: loop header
LB: loop body
LE: loop exit
PB: predicated region body
PF: predicated region fallthrough
CT: control target
= control target key end

     0   :  { %15 = vsyncpa [#allocation3], 0  ;;  %s841_s0 = inlined_call_operand.vmem [shape: f32[8,8], index: 0, kind: input, shape index: {}]   ;;  %s842_s1 = inlined_call_operand.hbm [shape: bf16[8,64], index: 1, kind: input, shape index: {}]   ;;  %s843_s2 = inlined_call_operand.vmem [shape: bf16[64,64], index: 2, kind: input, shape index: {}]   ;;  %s844_s3 = inlined_call_operand.vmem [shape: bf16[64,32], index: 3, kind: input, shape index: {}]   ;;  %s845_s4 = inlined_call_operand.hbm [shape: bf16[32,32], index: 4, kind: input, shape index: {}]   ;;  %s846_s5 = inlined_call_operand.vmem [shape: bf16[32,256], index: 5, kind: input, shape index: {}]   ;;  %s847_s6 = inlined_call_operand.hbm [shape: f32[1,768], index: 6, kind: input, shape index: {}]   ;;  %s848_s7 = inlined_call_operand.vmem [shape: f32[8,128], index: 7, kind: input, shape index: {}]   ;;  %s849_s8 = inlined_call_operand.vmem [shape: f32[8,128], index: 8, kind: output, shape index: {0}]   ;;  %s850_s9 = inlined_call_operand.vmem [shape: f32[8,128], index: 9, kind: output, shape index: {1}]  }
   0x1   :  { %16 = vsyncpa [#allocation5], 0  ;;  %s676_s30 = smov [#allocation4]   ;;  %s606_s13 = scalar_lea.hbm %s845_s4, 256 }
   0x2   :  { %s38_s10 = sshll.u32 %s676_s30, 4  ;;  %p607_p0 = scmp.ne.s32.totalorder %s845_s4, %s606_s13  ;;  %s39_s10 = int_to_ptr.vmem [resolvable:$true] %s38_s10 }
   0x3   :  { %p610_p1 = scmp.lt.u32.totalorder %s606_s13, %s845_s4 }
   0x5   :  { %p612_p2 = pnand %p610_p1, %p607_p0 }
   0x7   :  { %615 = shalt.err (!%p612_p2)
}
   0x8   :  { %s616_s18 = scalar_lea.vmem %s39_s10, 256  ;;  %p621_p4 = scmp.lt.s32.totalorder %s39_s10, %s39_s10 }
   0x9   :  { %p617_p3 = scmp.ne.s32.totalorder %s39_s10, %s616_s18  ;;  %p622_p5 = scmp.lt.s32.totalorder %s616_s18, %s616_s18 }
   0xb   :  { %p623_p6 = por %p622_p5, %p621_p4 }
   0xd   :  { %p624_p7 = pnand %p623_p6, %p617_p3 }
   0xf   :  { %627 = shalt.err (!%p624_p7)
}
  0x10   :  { %s677_s19 = smov 64   ;;  %s678_s20 = smov 4  }
  0x11   :  { %44 = dma.hbm_to_vmem [thread:$0]  %s845_s4, 256, %s39_s10, [#allocation5], %s677_s19, %s677_s19, %s678_s20  }
  0x12   :  { %s679_s23 = smov [#allocation2]   ;;  %s680_s25 = smov [#allocation6]  }
  0x13   :  { %s25_s24 = sshll.u32 %s679_s23, 4  ;;  %s53_s26 = sshll.u32 %s680_s25, 4  ;;  %s26_s24 = int_to_ptr.vmem [resolvable:$true] %s25_s24  ;;  %s54_s26 = int_to_ptr.vmem [resolvable:$true] %s53_s26 }
  0x14   :  { %s628_s29 = scalar_lea.hbm %s842_s1, 64 }
  0x15   :  { %p629_p8 = scmp.ne.s32.totalorder %s842_s1, %s628_s29  ;;  %p632_p9 = scmp.lt.u32.totalorder %s628_s29, %s842_s1 }
  0x17   :  { %p634_p10 = pnand %p632_p9, %p629_p8 }
  0x19   :  { %637 = shalt.err (!%p634_p10)
}
  0x1a   :  { %s638_s4 = scalar_lea.vmem %s26_s24, 64  ;;  %p643_p12 = scmp.lt.s32.totalorder %s26_s24, %s26_s24 }
  0x1b   :  { %p639_p11 = scmp.ne.s32.totalorder %s26_s24, %s638_s4  ;;  %p644_p13 = scmp.lt.s32.totalorder %s638_s4, %s638_s4 }
  0x1d   :  { %p645_p0 = por %p644_p13, %p643_p12 }
  0x1f   :  { %p646_p1 = pnand %p645_p0, %p639_p11 }
  0x21   :  { %649 = shalt.err (!%p646_p1)
}
  0x22   :  { %28 = dma.hbm_to_vmem [thread:$0]  %s842_s1, 64, %s26_s24, [#allocation3]  }
  0x23   :  { %s650_s17 = scalar_lea.hbm %s847_s6, 96 }
  0x24   :  { %p651_p2 = scmp.ne.s32.totalorder %s847_s6, %s650_s17  ;;  %p654_p3 = scmp.lt.u32.totalorder %s650_s17, %s847_s6 }
  0x26   :  { %p656_p4 = pnand %p654_p3, %p651_p2 }
  0x28   :  { %659 = shalt.err (!%p656_p4)
}
  0x29   :  { %s660_s22 = scalar_lea.vmem %s54_s26, 96  ;;  %p665_p6 = scmp.lt.s32.totalorder %s54_s26, %s54_s26 }
  0x2a   :  { %p661_p5 = scmp.ne.s32.totalorder %s54_s26, %s660_s22  ;;  %p666_p7 = scmp.lt.s32.totalorder %s660_s22, %s660_s22 }
  0x2c   :  { %p667_p8 = por %p666_p7, %p665_p6 }
  0x2e   :  { %p668_p9 = pnand %p667_p8, %p661_p5 }
  0x30   :  { %671 = shalt.err (!%p668_p9)
}
  0x31   :  { %56 = dma.hbm_to_vmem [thread:$0]  %s847_s6, 96, %s54_s26, [#allocation5]  }
  0x32   :  { %672 = dma.done.wait [#allocation3], 64  }
  0x33   :  { %673 = vsyncadd [#allocation3], 4294967232 }
  0x34   :  { %674 = dma.done.wait [#allocation5], 352  }
  0x35   :  { %675 = vsyncadd [#allocation5], 4294966944  ;;  %v681_v0 = vmov 0.0   ;;  %vm682_vm0 = vmmov 0   ;;  %vm83_vm1 = vcmask 1043456   ;;  %v69_v2 = vld [vmem:[%s841_s0] sm:$0xff]  ;;  %v378_v54 = vlaneseq }
  0x36   :  { %534 = vmatprep.subr.bf16.mxu0 %v681_v0  ;;  %536 = vmatprep.mubr.msk.bf16.mxu0 %vm682_vm0, %v681_v0  ;;  %v71_v1 = vld [vmem:[#allocation2] sm:$0xf]  ;;  %v70_v4 = vpack.c.bf16 %v69_v2, %v69_v2  ;;  %vm79_vm2 = vcmask 64512   ;;  %v581_v6 = vld [vmem:[%s843_s2 + $0x8] sm:$0xff]   ;;  %v582_v7 = vld [vmem:[%s843_s2 + $0x10] sm:$0xff]   ;;  %vm170_vm4 = vcmask 523264  }
  0x37   :  { %540 = vmatprep.subr.bf16.mxu1 %v681_v0  ;;  %548 = vmatprep.mubr.msk.bf16.mxu1 %vm682_vm0, %v681_v0  ;;  %v85_v3 = vsel %vm83_vm1, %v71_v1, 0  ;;  %v580_v5 = vld [vmem:[%s843_s2] sm:$0xff]   ;;  %v583_v8 = vld [vmem:[%s843_s2 + $0x18] sm:$0xff]   ;;  %v585_v10 = vld [vmem:[%s844_s3 + $0x8] sm:$0xff]   ;;  %vm327_vm7 = vcmask 261120   ;;  %v683_v46 = vmov 0  }
  0x38   :  { %535 = vmatpush3.bf16.msra.mxu0 %v85_v3  ;;  %541 = vmatpush3.bf16.msra.mxu1 %v580_v5  ;;  %v584_v9 = vld [vmem:[%s844_s3] sm:$0xff]   ;;  %v495_v11 = vld [vmem:[#allocation6] ss:$0 sm:$0xff]  ;;  %v587_v21 = vld [vmem:[%s844_s3 + $0x18] sm:$0xff]   ;;  %v379_v55 = vshrl.u32 %v378_v54, 7 }
  0x39   :  { %552 = vmatprep.subr.bf16.mxu0 %v681_v0  ;;  %542 = vmatprep.subr.bf16.mxu1 %v681_v0  ;;  %v586_v20 = vld [vmem:[%s844_s3 + $0x10] sm:$0xff]   ;;  %v588_v31 = vld [vmem:[#allocation4] sm:$0xff]   ;;  %v376_v57 = vld [vmem:[#allocation6 + $0x4] sm:$0x3] }
  0x3a   :  { %v497_v22 = vld [vmem:[#allocation6 + $0x1] ss:$0 sm:$0xff]  ;;  %v589_v32 = vld [vmem:[#allocation4 + $0x8] sm:$0xff]   ;;  %v590_v33 = vld [vmem:[%s846_s5] ss:$8 sps:$4 sm:$0xff]   ;;  %v384_v56 = vsub.s32 1, %v379_v55 }
  0x3b   :  { %537 = vmatmul.mubr.msk.bf16.vlgmr.msra.gmra.mrb[0].mxu0 %vm79_vm2, %v70_v4  ;;  %v592_v34 = vld [vmem:[%s846_s5 + $0x4] ss:$8 sps:$4 sm:$0xff]   ;;  %v503_v35 = vld [vmem:[#allocation6 + $0x2] ss:$0 sm:$0xff]  ;;  %v593_v45 = vld [vmem:[%s846_s5 + $0x10] ss:$8 sps:$4 sm:$0xff]  }
  0x3c   :  { %560 = vmatprep.mubr.msk.bf16.mxu0 %vm682_vm0, %v681_v0  ;;  %543 = vmatpush3.bf16.msra.mxu1 %v581_v6  ;;  %v595_v44 = vld [vmem:[%s846_s5 + $0x14] ss:$8 sps:$4 sm:$0xff]   ;;  %v385_v58 = vrot.slane %v376_v57, %v384_v56 }
  0x3d   :  { %544 = vmatprep.subr.bf16.mxu1 %v681_v0  ;;  %553 = vmatpush3.bf16.msra.mxu0 %v584_v9  ;;  %v509_v47 = vld [vmem:[#allocation6 + $0x3] ss:$0 sm:$0xff] }
  0x3e   :  { %554 = vmatprep.subr.bf16.mxu0 %v681_v0 }
  0x40   :  { %545 = vmatpush3.bf16.msra.mxu1 %v582_v7  ;;  %v380_v7 = vsub.s32 0, %v379_v55 }
  0x41   :  { %546 = vmatprep.subr.bf16.mxu1 %v681_v0  ;;  %555 = vmatpush3.bf16.msra.mxu0 %v585_v10 }
  0x42   :  { %556 = vmatprep.subr.bf16.mxu0 %v681_v0 }
  0x44   :  { %547 = vmatpush3.bf16.msra.mxu1 %v583_v8 }
  0x45   :  { %564 = vmatprep.subr.bf16.mxu1 %v681_v0  ;;  %557 = vmatpush3.bf16.msra.mxu0 %v586_v20 }
  0x46   :  { %558 = vmatprep.subr.bf16.mxu0 %v681_v0 }
  0x49   :  { %559 = vmatpush3.bf16.msra.mxu0 %v587_v21 }
  0x4a   :  { %411 = vmatprep.subr.bf16.mxu0 %v592_v34 }
 0x10e   :  { %v121_v12 = vpop.f32.mrb[0].mxu0 }
 0x10f   :  { %v122_v13 = vadd.f32 %v495_v11, %v121_v12  ;;  %v538_v14 = vpop.f32.mrb[1].mxu0  ;;  %v381_v12 = vrot.slane %v376_v57, %v380_v7 }
 0x110   :  { %v124_v15 = vpop.f32.mrb[2].mxu0 }
 0x111   :  { %vm127_vm3 = vcmp.ge.f32.partialorder %v122_v13, 0.0  ;;  %v128_v16 = vmul.f32 0.01, %v122_v13  ;;  %v539_v17 = vpop.f32.mrb[3].mxu0  ;;  %v467_v15 = vld [vmem:[%s848_s7] sm:$0xff] }
 0x113   :  { %v129_v18 = vsel %vm127_vm3, %v122_v13, %v128_v16 }
 0x114   :  { %v130_v19 = vpack.c.bf16 %v129_v18, %v129_v18 }
 0x116   :  { %549 = vmatmul.mubr.msk.bf16.vlgmr.msra.gmra.mrb[0].mxu1 %vm170_vm4, %v130_v19 }
 0x117   :  { %568 = vmatprep.mubr.msk.bf16.mxu1 %vm682_vm0, %v681_v0  ;;  %565 = vmatpush3.bf16.msra.mxu1 %v588_v31 }
 0x118   :  { %566 = vmatprep.subr.bf16.mxu1 %v681_v0 }
 0x11b   :  { %567 = vmatpush3.bf16.msra.mxu1 %v589_v32 }
 0x1e9   :  { %v208_v23 = vpop.f32.mrb[0].mxu1 }
 0x1ea   :  { %v209_v24 = vadd.f32 %v497_v22, %v208_v23  ;;  %v550_v25 = vpop.f32.mrb[1].mxu1 }
 0x1eb   :  { %v211_v26 = vpop.f32.mrb[2].mxu1 }
 0x1ec   :  { %vm214_vm5 = vcmp.ge.f32.partialorder %v209_v24, 0.0  ;;  %v215_v27 = vmul.f32 0.01, %v209_v24  ;;  %v551_v28 = vpop.f32.mrb[3].mxu1 }
 0x1ee   :  { %v216_v29 = vsel %vm214_vm5, %v209_v24, %v215_v27  ;;  %v471_v24 = vmul.f32 -0.5, %v467_v15 }
 0x1ef   :  { %v217_v30 = vpack.c.bf16 %v216_v29, %v216_v29 }
 0x1f0   :  { %v472_v26 = vmul.f32 %v471_v24, %v467_v15 }
 0x1f1   :  { %561 = vmatmul.mubr.msk.bf16.vlgmr.msra.gmra.mrb[4].mxu0 %vm170_vm4, %v217_v30 }
 0x1f2   :  { %412 = vmatpush1.bf16.msra.mxu0 %v590_v33  ;;  %443 = vmatprep.mubr.bf16.mxu0 %v683_v46 }
 0x1f3   :  { %413 = vmatprep.subr.bf16.mxu0 %v595_v44 }
 0x1f6   :  { %414 = vmatpush1.bf16.msra.mxu0 %v593_v45 }
 0x2c4   :  { %v294_v36 = vpop.f32.mrb[4].mxu0 }
 0x2c5   :  { %v295_v37 = vadd.f32 %v503_v35, %v294_v36  ;;  %v562_v38 = vpop.f32.mrb[5].mxu0 }
 0x2c6   :  { %v297_v39 = vpop.f32.mrb[6].mxu0 }
 0x2c7   :  { %vm300_vm6 = vcmp.ge.f32.partialorder %v295_v37, 0.0  ;;  %v301_v40 = vmul.f32 0.01, %v295_v37  ;;  %v563_v41 = vpop.f32.mrb[7].mxu0 }
 0x2c9   :  { %v302_v42 = vsel %vm300_vm6, %v295_v37, %v301_v40 }
 0x2ca   :  { %v303_v43 = vpack.c.bf16 %v302_v42, %v302_v42 }
 0x2cc   :  { %569 = vmatmul.mubr.msk.bf16.vlgmr.msra.gmra.mrb[4].mxu1 %vm327_vm7, %v303_v43 }
 0x39f   :  { %v365_v48 = vpop.f32.mrb[4].mxu1 }
 0x3a0   :  { %v366_v49 = vadd.f32 %v509_v47, %v365_v48  ;;  %v570_v50 = vpop.f32.mrb[5].mxu1 }
 0x3a1   :  { %v368_v51 = vpop.f32.mrb[6].mxu1 }
 0x3a2   :  { %v371_v52 = vpack.c.bf16 %v366_v49, %v366_v49  ;;  %v571_v53 = vpop.f32.mrb[7].mxu1 }
 0x3a4   :  { %517 = vmatmul.mubr.msk.bf16.vlgmr.msra.gmra.mrb[8].mxu0 %vm327_vm7, %v371_v52 }
 0x477   :  { %v445_v59 = vpop.f32.mrb[8].mxu0 }
 0x478   :  { %v447_v60 = vpop.f32.mrb[9].mxu0  ;;  %v446_v17 = vadd.f32 %v445_v59, %v381_v12 }
 0x479   :  { %v448_v61 = vadd.f32 %v447_v60, %v385_v58  ;;  %v449_v62 = vpop.f32.mrb[10].mxu0 }
 0x47a   :  { %v450_v63 = vpop.f32.mrb[11].mxu0 }
 0x47b   :  { %v453_v0 = vand.u32 2147483647, %v448_v61  ;;  %v452_v13 = vmax.f32 %v448_v61, 0.0 }
 0x47d   :  { %v454_v1 = vsub.f32 0.0, %v453_v0 }
 0x47f   :  { %v455_v2 = vmul.f32 1.442695, %v454_v1 }
 0x481   :  { %596 = vpow2.f32 %v455_v2 }
 0x48b   :  { %v597_v3 = vpop.eup %596 }
 0x48c   :  { %v457_v4 = vadd.f32 1.0, %v597_v3  ;;  %v460_v5 = vmul.f32 -0.5, %v597_v3  ;;  %v463_v8 = vand.u32 2147483647, %v597_v3 }
 0x48e   :  { %598 = vlog2.f32 %v457_v4  ;;  %v461_v6 = vadd.f32 1.0, %v460_v5  ;;  %vm464_vm8 = vcmp.lt.f32.partialorder %v463_v8, 0.0004427343 }
 0x490   :  { %v462_v11 = vmul.f32 %v597_v3, %v461_v6 }
 0x498   :  { %v599_v9 = vpop.eup %598 }
 0x499   :  { %v459_v10 = vmul.f32 0.6931472, %v599_v9 }
 0x49b   :  { %v465_v14 = vsel %vm464_vm8, %v462_v11, %v459_v10 }
 0x49c   :  { %v466_v16 = vadd.f32 %v465_v14, %v452_v13 }
 0x49e   :  { %v468_v18 = vmul.f32 %v467_v15, %v466_v16 }
 0x4a0   :  { %v469_v19 = vadd.f32 %v468_v18, %v446_v17 }
 0x4a2   :  { %600 = vtanh.f32 %v469_v19 }
 0x4a3   :  { %602 = vlog2.f32 %v466_v16 }
 0x4ac   :  { %v601_v20 = vpop.eup %600 }
 0x4ad   :  { %v477_v21 = vmul.f32 %v601_v20, %v601_v20  ;;  %483 = vst [vmem:[%s849_s8] sm:$0xff] %v601_v20  ;;  %v603_v25 = vpop.eup %602 }
 0x4ae   :  { %v474_v27 = vmul.f32 0.6931472, %v603_v25 }
 0x4af   :  { %v478_v22 = vsub.f32 1.0, %v477_v21 }
 0x4b0   :  { %v475_v28 = vsub.f32 %v472_v26, %v474_v27 }
 0x4b1   :  { %v479_v23 = vadd.f32 1e-07, %v478_v22 }
 0x4b2   :  { %v518_v30 = vadd.f32 -0.9189385, %v475_v28 }
 0x4b3   :  { %604 = vlog2.f32 %v479_v23 }
 0x4bd   :  { %v605_v29 = vpop.eup %604 }
 0x4be   :  { %v481_v31 = vmul.f32 0.6931472, %v605_v29 }
 0x4c0   :  { %v482_v32 = vsub.f32 %v518_v30, %v481_v31 }
 0x4c2   :  { %484 = vst [vmem:[%s850_s9] sm:$0xff] %v482_v32 }
 0x4c3   :  { %493 = vsyncpa [#allocation3], 1 }
 0x4c4   :  { %494 = vsyncpa [#allocation5], 1 }

</bundles_post_ra>
